<compile_context>
chip_gen: v5e
topology: v5e:2x2
jax: 0.10.0
libtpu: 0.0.40
codegen_flags: <defaults>
</compile_context>

<pallas_src>
import functools

import jax
import jax.numpy as jnp
from jax import lax
from jax.experimental import pallas as pl
from jax.experimental.pallas import tpu as pltpu

LANES = 128
MAX_TILE_ROWS = 1024      # (1024, 128) f32 tile = 512 KiB per pipeline buffer
NUM_CORES = 2             # megacore split for v7x; negligible cost on 1-TC chips


def _ganloss_kernel(x_ref, out_ref, acc_ref, *, target_val, gan_type,
                    tile_rows, tiles_per_core, total_tiles, full_rows, rem):
    p = pl.program_id(0)                # parallel axis (TensorCore shard)
    i = pl.program_id(1)                # reduction axis (row tiles per core)
    t = p * tiles_per_core + i          # global row-tile index

    @pl.when(i == 0)
    def _init():
        acc_ref[...] = jnp.zeros_like(acc_ref)

    x = x_ref[...].astype(jnp.float32)

    if gan_type == 'lsgan':
        d = x - target_val
        per = d * d                     # MSELoss per element
    else:
        # BCEWithLogitsLoss per element, numerically stable form:
        # max(x, 0) - x*y + log(1 + exp(-|x|))
        per = (jnp.maximum(x, 0.0) - x * target_val
               + jnp.log1p(jnp.exp(-jnp.abs(x))))

    # Steady-state tiles: pure elementwise accumulate (no iota/mask/reduce).
    @pl.when(t < total_tiles - 1)
    def _acc_body():
        acc_ref[...] += per

    # Only the ragged last tile (and the megacore split's fully out-of-range
    # duplicate tiles) pay for the mask.
    @pl.when(t >= total_tiles - 1)
    def _acc_tail():
        r = lax.broadcasted_iota(jnp.int32, per.shape, 0)
        c = lax.broadcasted_iota(jnp.int32, per.shape, 1)
        grow = t * tile_rows + r        # global row index (int32: fine < 2^31 rows)
        mask = (grow < full_rows - 1) | ((grow == full_rows - 1) & (c < rem))
        acc_ref[...] += jnp.where(mask, per, 0.0)

    @pl.when(i == pl.num_programs(1) - 1)
    def _finalize():
        # Single cross-lane/sublane reduce per core, off the steady-state path.
        out_ref[0] = jnp.sum(acc_ref[...], axis=(0, 1), keepdims=True)


def gan_loss(x, target_is_real, *, gan_type='lsgan',
             real_label_val=1.0, fake_label_val=0.0):
    """Equivalent of GANLoss.forward(input, target_is_real).

    target_is_real is a Python bool (as in the reference module's call sites),
    so the target label folds in as a compile-time constant.
    """
    gan_type = gan_type.lower()
    if gan_type not in ('vanilla', 'lsgan'):
        raise NotImplementedError('Unsupported GAN type: {}'.format(gan_type))

    target_val = float(real_label_val if target_is_real else fake_label_val)

    n_valid = int(x.size)
    rows = pl.cdiv(n_valid, LANES)
    rem = n_valid - (rows - 1) * LANES       # valid lanes in the last row

    flat = jnp.ravel(x)                      # native dtype; no wrapper-side cast
    pad = rows * LANES - n_valid
    if pad:                                  # only when size % 128 != 0
        flat = jnp.pad(flat, (0, pad))
    x2d = flat.reshape(rows, LANES)

    # Largest sensible tile, aligned to the dtype's native sublane tile.
    itemsize = jnp.dtype(x.dtype).itemsize
    row_align = 8 * max(1, 4 // itemsize)
    tile_rows = min(MAX_TILE_ROWS, pl.cdiv(rows, row_align) * row_align)

    total_tiles = pl.cdiv(rows, tile_rows)
    tiles_per_core = pl.cdiv(total_tiles, NUM_CORES)

    kernel = functools.partial(
        _ganloss_kernel,
        target_val=target_val, gan_type=gan_type,
        tile_rows=tile_rows, tiles_per_core=tiles_per_core,
        total_tiles=total_tiles, full_rows=rows, rem=rem)

    def in_map(p, i):
        # Clamp so the megacore split's out-of-range tail tiles (fully masked
        # inside the kernel) never address past the end of the array.
        return (jnp.minimum(p * tiles_per_core + i, total_tiles - 1), 0)

    partials = pl.pallas_call(
        kernel,
        out_shape=jax.ShapeDtypeStruct((NUM_CORES, 1, 1), jnp.float32),
        grid_spec=pltpu.PrefetchScalarGridSpec(
            num_scalar_prefetch=0,
            grid=(NUM_CORES, tiles_per_core),
            in_specs=[pl.BlockSpec((tile_rows, LANES), in_map)],
            out_specs=pl.BlockSpec((1, 1, 1), lambda p, i: (p, 0, 0)),
            scratch_shapes=[pltpu.VMEM((tile_rows, LANES), jnp.float32)],
        ),
        compiler_params=pltpu.CompilerParams(
            dimension_semantics=("parallel", "arbitrary")),
    )(x2d)
    # Combine the per-core partial sums and normalize (mean reduction).
    return jnp.sum(partials) * (1.0 / n_valid)


def _gan_loss_ref(x, target_is_real, *, gan_type='lsgan',
                  real_label_val=1.0, fake_label_val=0.0):
    """Pure-JAX reference for correctness checking."""
    tv = real_label_val if target_is_real else fake_label_val
    xf = x.astype(jnp.float32)
    if gan_type.lower() == 'lsgan':
        per = (xf - tv) ** 2
    else:
        per = jnp.maximum(xf, 0.0) - xf * tv + jnp.log1p(jnp.exp(-jnp.abs(xf)))
    return jnp.mean(per)


if __name__ == "__main__":
    key = jax.random.PRNGKey(0)
    # Discriminator logits, NCHW like the PyTorch module would receive.
    x = jax.random.normal(key, (2, 4, 16, 16), dtype=jnp.float32)

    results = []
    for gt in ('lsgan', 'vanilla'):
        for tir in (True, False):
            got = jax.block_until_ready(gan_loss(x, tir, gan_type=gt))
            ref = _gan_loss_ref(x, tir, gan_type=gt)
            assert jnp.allclose(got, ref, rtol=1e-5, atol=1e-6), (gt, tir, got, ref)
            results.append(got)

    jax.block_until_ready(results)
    print("KERNEL_OK")
</pallas_src>

<mosaic_0001>
module attributes {stable_mosaic.version = 11 : i64} {
  func.func @_ganloss_kernel(%arg0: i32, %arg1: i32, %arg2: memref<16x128xf32, #tpu.memory_space<vmem>>, %arg3: memref<1x1x1xf32, #tpu.memory_space<vmem>>, %arg4: memref<16x128xf32, #tpu.memory_space<vmem>>) attributes {dimension_semantics = [#tpu.dimension_semantics<parallel>, #tpu.dimension_semantics<arbitrary>], iteration_bounds = array<i64: 2, 1>, scalar_prefetch = 0 : i64, scratch_operands = 1 : i64, tpu.core_type = #tpu.core_type<tc>, window_params = [{transform_indices = @transform_0, window_bounds = array<i64: 16, 128>}, {transform_indices = @transform_1, window_bounds = array<i64: 1, 1, 1>}]} {
    %c1_i32 = arith.constant 1 : i32
    %0 = arith.muli %arg0, %c1_i32 : i32
    %1 = arith.addi %0, %arg1 : i32
    %c0_i32 = arith.constant 0 : i32
    %2 = arith.cmpi eq, %arg1, %c0_i32 : i32
    %3 = arith.extui %2 : i1 to i32
    %c0_i32_0 = arith.constant 0 : i32
    %4 = arith.cmpi ne, %3, %c0_i32_0 : i32
    scf.if %4 {
      %cst_8 = arith.constant 0.000000e+00 : f32
      %18 = vector.broadcast %cst_8 : f32 to vector<16x128xf32>
      %c0_9 = arith.constant 0 : index
      %c0_10 = arith.constant 0 : index
      %19 = vector.load %arg4[%c0_9, %c0_10] : memref<16x128xf32, #tpu.memory_space<vmem>>, vector<16x128xf32>
      tpu.vector_store %arg4[%c0_9, %c0_10], %18 {strides = array<i32>} : memref<16x128xf32, #tpu.memory_space<vmem>>, vector<16x128xf32>,
    } else {
    }
    %c0 = arith.constant 0 : index
    %c0_1 = arith.constant 0 : index
    %5 = vector.load %arg2[%c0, %c0_1] : memref<16x128xf32, #tpu.memory_space<vmem>>, vector<16x128xf32>
    %cst = arith.constant 1.000000e+00 : f32
    %6 = vector.broadcast %cst : f32 to vector<16x128xf32>
    %7 = arith.subf %5, %6 : vector<16x128xf32>
    %8 = arith.mulf %7, %7 : vector<16x128xf32>
    %c0_i32_2 = arith.constant 0 : i32
    %9 = arith.cmpi slt, %1, %c0_i32_2 : i32
    %10 = arith.extui %9 : i1 to i32
    %c0_i32_3 = arith.constant 0 : i32
    %11 = arith.cmpi ne, %10, %c0_i32_3 : i32
    scf.if %11 {
      %c0_8 = arith.constant 0 : index
      %c0_9 = arith.constant 0 : index
      %18 = vector.load %arg4[%c0_8, %c0_9] : memref<16x128xf32, #tpu.memory_space<vmem>>, vector<16x128xf32>
      %19 = arith.addf %18, %8 : vector<16x128xf32>
      %c0_10 = arith.constant 0 : index
      %c0_11 = arith.constant 0 : index
      %20 = vector.load %arg4[%c0_10, %c0_11] : memref<16x128xf32, #tpu.memory_space<vmem>>, vector<16x128xf32>
      tpu.vector_store %arg4[%c0_10, %c0_11], %19 {strides = array<i32>} : memref<16x128xf32, #tpu.memory_space<vmem>>, vector<16x128xf32>,
    } else {
    }
    %c0_i32_4 = arith.constant 0 : i32
    %12 = arith.cmpi sge, %1, %c0_i32_4 : i32
    %13 = arith.extui %12 : i1 to i32
    %c0_i32_5 = arith.constant 0 : i32
    %14 = arith.cmpi ne, %13, %c0_i32_5 : i32
    scf.if %14 {
      %18 = tpu.iota {dimensions = array<i32: 0>} : vector<16x128xi32>
      %19 = tpu.iota {dimensions = array<i32: 1>} : vector<16x128xi32>
      %c16_i32 = arith.constant 16 : i32
      %20 = arith.muli %1, %c16_i32 : i32
      %21 = vector.broadcast %20 : i32 to vector<16x128xi32>
      %22 = arith.addi %21, %18 : vector<16x128xi32>
      %c15_i32 = arith.constant 15 : i32
      %23 = vector.broadcast %c15_i32 : i32 to vector<16x128xi32>
      %24 = arith.cmpi slt, %22, %23 : vector<16x128xi32>
      %c15_i32_8 = arith.constant 15 : i32
      %25 = vector.broadcast %c15_i32_8 : i32 to vector<16x128xi32>
      %26 = arith.cmpi eq, %22, %25 : vector<16x128xi32>
      %c128_i32 = arith.constant 128 : i32
      %27 = vector.broadcast %c128_i32 : i32 to vector<16x128xi32>
      %28 = arith.cmpi slt, %19, %27 : vector<16x128xi32>
      %29 = arith.andi %26, %28 : vector<16x128xi1>
      %30 = arith.ori %24, %29 : vector<16x128xi1>
      %c0_9 = arith.constant 0 : index
      %c0_10 = arith.constant 0 : index
      %31 = vector.load %arg4[%c0_9, %c0_10] : memref<16x128xf32, #tpu.memory_space<vmem>>, vector<16x128xf32>
      %cst_11 = arith.constant 0.000000e+00 : f32
      %32 = vector.broadcast %cst_11 : f32 to vector<16x128xf32>
      %33 = arith.select %30, %8, %32 : vector<16x128xi1>, vector<16x128xf32>
      %34 = arith.addf %31, %33 : vector<16x128xf32>
      %c0_12 = arith.constant 0 : index
      %c0_13 = arith.constant 0 : index
      %35 = vector.load %arg4[%c0_12, %c0_13] : memref<16x128xf32, #tpu.memory_space<vmem>>, vector<16x128xf32>
      tpu.vector_store %arg4[%c0_12, %c0_13], %34 {strides = array<i32>} : memref<16x128xf32, #tpu.memory_space<vmem>>, vector<16x128xf32>,
    } else {
    }
    %c0_i32_6 = arith.constant 0 : i32
    %15 = arith.cmpi eq, %arg1, %c0_i32_6 : i32
    %16 = arith.extui %15 : i1 to i32
    %c0_i32_7 = arith.constant 0 : i32
    %17 = arith.cmpi ne, %16, %c0_i32_7 : i32
    scf.if %17 {
      %c0_8 = arith.constant 0 : index
      %c0_9 = arith.constant 0 : index
      %18 = vector.load %arg4[%c0_8, %c0_9] : memref<16x128xf32, #tpu.memory_space<vmem>>, vector<16x128xf32>
      %19 = vector.shape_cast %18 : vector<16x128xf32> to vector<1x16x128xf32>
      %cst_10 = arith.constant dense<0.000000e+00> : vector<1xf32>
      %20 = vector.multi_reduction <add>, %19, %cst_10 [1, 2] : vector<1x16x128xf32> to vector<1xf32>
      %21 = vector.shape_cast %20 : vector<1xf32> to vector<1x1x1xf32>
      %22 = vector.extract %21[0, 0, 0] : f32 from vector<1x1x1xf32>
      %23 = vector.broadcast %22 : f32 to vector<1x1xf32>
      %c0_11 = arith.constant 0 : index
      %c0_12 = arith.constant 0 : index
      %c0_13 = arith.constant 0 : index
      %24 = vector.load %arg3[%c0_11, %c0_12, %c0_13] : memref<1x1x1xf32, #tpu.memory_space<vmem>>, vector<1x1x1xf32>
      %25 = vector.shape_cast %24 : vector<1x1x1xf32> to vector<1x1xf32>
      %26 = vector.shape_cast %23 : vector<1x1xf32> to vector<1x1x1xf32>
      tpu.vector_store %arg3[%c0_11, %c0_12, %c0_13], %26 {strides = array<i32>} : memref<1x1x1xf32, #tpu.memory_space<vmem>>, vector<1x1x1xf32>,
    } else {
    }
    return
  }
  func.func @transform_0(%arg0: i32, %arg1: i32) -> (i32, i32) {
    %c1_i32 = arith.constant 1 : i32
    %0 = arith.muli %arg0, %c1_i32 : i32
    %1 = arith.addi %0, %arg1 : i32
    %c0_i32 = arith.constant 0 : i32
    %2 = arith.minsi %1, %c0_i32 : i32
    %c0_i32_0 = arith.constant 0 : i32
    %c0_i32_1 = arith.constant 0 : i32
    return %2, %c0_i32_0 : i32, i32
  }
  func.func @transform_1(%arg0: i32, %arg1: i32) -> (i32, i32, i32) {
    %c0_i32 = arith.constant 0 : i32
    %c0_i32_0 = arith.constant 0 : i32
    %c0_i32_1 = arith.constant 0 : i32
    return %arg0, %c0_i32, %c0_i32_0 : i32, i32, i32
  }
}

</mosaic_0001>

<bundles_post_ra>
// kernel: tpu_custom_call.1
= control target key start
LH: loop header
LB: loop body
LE: loop exit
PB: predicated region body
PF: predicated region fallthrough
CT: control target
= control target key end

     0   :  { %6 = vsyncpa [#allocation4], 0  ;;  %s558_s0 = inlined_call_operand.hbm [shape: f32[16,128], index: 0, kind: input, shape index: {}]   ;;  %s559_s1 = inlined_call_operand.vmem [shape: f32[2,1,1], index: 1, kind: output, shape index: {}]  }
   0x1   :  { %8 = vsyncpa [#allocation4 + $0x1], 0  ;;  %s468_s6 = smov 0   ;;  %s470_s7 = smov 0  }
   0x2   :  { %s472_s8 = smov 0   ;;  %s474_s9 = smov 0  }
   0x3   :  { %s476_s10 = smov 0  }
   0x4 LB: > { %s298_s11 = sadd.s32 4294967295, %s452_s10   ;;  %s26_s12 = sadd.s32 1, %s448_s9  ;;  %s452_s10 = sphi %s476_s10, %s14_s10   ;;  %s448_s9 = sphi %s474_s9, %s564_s9   ;;  %s444_s8 = sphi %s472_s8, %s563_s8   ;;  %s440_s7 = sphi %s470_s7, %s548_s7   ;;  %s436_s6 = sphi %s468_s6, %s562_s6  }
   0x5   : > { %p28_p0 = scmp.ge.s32.totalorder %s26_s12, 2  ;;  %p433_p1 = scmp.ne.s32.totalorder %s440_s7, 0 }
   0x6   : > { %p47_p2 = scmp.eq.s32.totalorder %s452_s10, 0  ;;  %p52_p3 = scmp.ne.s32.totalorder %s440_s7, %s436_s6 }
   0x7   : > { %s566_s12 = smov (%p28_p0, %s26_s12), 0  ;;  %p53_p4 = scmp.eq.s32.totalorder %s298_s11, 0 }
   0x8   : > { %p48_p5 = por %p433_p1, %p47_p2  ;;  %p323_p7 = scmp.lt.s32.totalorder %s452_s10, 2 }
   0x9   : > { %p498_p6 = por %p53_p4, %p52_p3  ;;  %s115_s16 = sshll.u32 %s558_s0, 4  ;;  %s116_s16 = int_to_ptr.hbm [resolvable:$true] %s115_s16 }
   0xa   : > { %s454_s17 = smov [#allocation3]   ;;  %p506_p8 = pnand %p323_p7, %p48_p5 }
   0xb   : > { %s117_s18 = sshll.u32 %s454_s17, 4  ;;  %p305_p9 = scmp.ge.s32.totalorder %s452_s10, 1  ;;  %s118_s18 = int_to_ptr.vmem [resolvable:$true] %s117_s18 }
   0xc   : > { %p125_p10 = scmp.lt.s32.totalorder %s452_s10, 3  ;;  %s375_s20 = sshra.s32 %s116_s16, 4  ;;  %s376_s20 = int_to_ptr.hbm [resolvable:$true] %s375_s20 }
   0xd   : > { %s377_s21 = scalar_lea.hbm %s376_s20, 16  ;;  %p379_p12 = pneg %p506_p8 }
   0xe   : > { %p378_p11 = scmp.ne.s32.totalorder %s376_s20, %s377_s21  ;;  %s382_s24 = scalar_lea.hbm %s558_s0, 16 }
   0xf   : > { %p384_p1 = scmp.lt.s32.totalorder %s382_s24, %s377_s21 }
  0x10   : > { %p380_p13 = pnand %p379_p12, %p378_p11 }
  0x12   : > { %p381_p0 = pneg %p380_p13 }
  0x14   : > { %p386_p2 = pnand %p384_p1, %p381_p0 }
  0x16   : > { %389 = shalt.err (!%p386_p2)
}
  0x17   : > { %s455_s25 = smov 128   ;;  %s456_s26 = smov 8  }
  0x18   : > { %322 = dma.hbm_to_vmem [thread:$0]  (!%p506_p8), %s116_s16, 256, %s118_s18, [#allocation4], %s455_s25, %s455_s25, %s456_s26  }
  0x19   : > { %p126_p3 = pnand %p305_p9, %p125_p10 }
  0x1a   : > { %s131_s27 = sand.u32 (!%p126_p3), 1, %s440_s7  }
  0x1b   : > { %129 = sbr.rel (%p126_p3) target bundleno = 256 (0x100), region = 24  ;;  %s306_s28 = sshll.u32 (!%p126_p3), %s131_s27, 4 }
  0x1c   : > { %s132_s29 = scalar_lea.sflag (!%p126_p3), [#allocation4], %s131_s27  ;;  %s135_s30 = scalar_lea.vmem (!%p126_p3), [#allocation3], %s306_s28 }
  0x20   : > { %430 = dma.done.wait (%p498_p6), %s132_s29, 256  }
  0x21   : > { %432 = vsyncadd (%p498_p6), %s132_s29, 4294967040  ;;  %p157_p4 = scmp.lt.s32.totalorder %s444_s8, 1  ;;  %v457_v0 = vmov 0.0   ;;  %v167_v1 = vld [vmem:[%s135_s30] sm:$0xff]  ;;  %v168_v2 = vld [vmem:[%s135_s30 + $0x8] sm:$0xff]  ;;  %p309_p5 = scmp.ge.s32.totalorder %s444_s8, 0 }
  0x22   : > { %165 = vst [vmem:[#allocation2] sm:$0xff] %v457_v0  ;;  %v307_v3 = vadd.f32 -1.0, %v167_v1  ;;  %v308_v4 = vadd.f32 -1.0, %v168_v2 }
  0x23   : > { %s530_s2 = scalar_select %p157_p4, %s444_s8, 1  ;;  %166 = vst [vmem:[#allocation2 + $0x8] sm:$0xff] %v457_v0 }
  0x24   : > { %v171_v5 = vmul.f32 %v307_v3, %v307_v3  ;;  %v172_v6 = vmul.f32 %v308_v4, %v308_v4  ;;  %176 = sbr.rel (%p309_p5) target bundleno = 46 (0x2e), region = 36 }
  0x25   : > { %s159_s5 = scalar_lea.vmem %s559_s1, %s530_s2 }
  0x29   : > { %v177_v7 = vld [vmem:[#allocation2] sm:$0xff] }
  0x2a   : > { %v178_v8 = vld [vmem:[#allocation2 + $0x8] sm:$0xff]  ;;  %v179_v9 = vadd.f32 %v177_v7, %v171_v5 }
  0x2b   : > { %v180_v10 = vadd.f32 %v178_v8, %v172_v6 }
  0x2c   : > { %181 = vst [vmem:[#allocation2] sm:$0xff] %v179_v9 }
  0x2d   : > { %182 = vst [vmem:[#allocation2 + $0x8] sm:$0xff] %v180_v10 }
  0x2e PF: > { %p310_p6 = scmp.lt.s32.totalorder %s444_s8, 0 }
  0x2f   : > { %s311_s6 = sshll.u32 (!%p310_p6), %s444_s8, 4 }
  0x30   : > { %186 = sbr.rel (%p310_p6) target bundleno = 67 (0x43), region = 40 }
  0x35   : > { %v187_v11 = vlaneseq  ;;  %v193_v12 = vstv %s311_s6  ;;  %v205_v16 = vld [vmem:[#allocation2] sm:$0xff]  ;;  %v206_v19 = vld [vmem:[#allocation2 + $0x8] sm:$0xff] }
  0x37   : > { %v188_v13 = vshrl.u32 %v187_v11, 7 }
  0x39   : > { %v194_v14 = vadd.s32 %v193_v12, %v188_v13  ;;  %v189_v15 = vadd.s32 8, %v188_v13 }
  0x3b   : > { %vm196_vm0 = vcmp.lt.s32.totalorder %v194_v14, 15  ;;  %vm198_vm1 = vcmp.eq.s32.totalorder %v194_v14, 15  ;;  %v195_v17 = vadd.s32 %v193_v12, %v189_v15 }
  0x3c   : > { %vm203_vm2 = vmor %vm196_vm0, %vm198_vm1 }
  0x3d   : > { %v207_v18 = vsel %vm203_vm2, %v171_v5, 0.0  ;;  %vm197_vm3 = vcmp.lt.s32.totalorder %v195_v17, 15  ;;  %vm199_vm4 = vcmp.eq.s32.totalorder %v195_v17, 15 }
  0x3e   : > { %v209_v20 = vadd.f32 %v207_v18, %v205_v16  ;;  %vm204_vm5 = vmor %vm197_vm3, %vm199_vm4 }
  0x3f   : > { %v208_v21 = vsel %vm204_vm5, %v172_v6, 0.0 }
  0x40   : > { %211 = vst [vmem:[#allocation2] sm:$0xff] %v209_v20  ;;  %v210_v22 = vadd.f32 %v208_v21, %v206_v19 }
  0x42   : > { %212 = vst [vmem:[#allocation2 + $0x8] sm:$0xff] %v210_v22 }
  0x43 PF: > { %vm229_vm6 = vcmask 0  }
  0x47   : > { %v216_v23 = vld [vmem:[#allocation2] sm:$0xff] }
  0x49   : > { %v217_v24 = vld [vmem:[#allocation2 + $0x8] sm:$0xff] }
  0x4a   : > { %v218_v25 = vadd.f32 %v217_v24, %v216_v23 }
  0x4c   : > { %219 = vadd.xlane.f32.xlu0 %v218_v25 }
  0xbf   : > { %v220_v26 = vpop.xlane.xlu0 %219 }
  0xc0   : > { %v221_v27 = vrot.slane %v220_v26, 4 }
  0xc2   : > { %v222_v28 = vadd.f32 %v221_v27, %v220_v26 }
  0xc4   : > { %v223_v29 = vrot.slane %v222_v28, 2 }
  0xc6   : > { %v224_v30 = vadd.f32 %v223_v29, %v222_v28 }
  0xc8   : > { %v225_v31 = vrot.slane %v224_v30, 1 }
  0xca   : > { %v226_v32 = vadd.f32 %v225_v31, %v224_v30 }
  0xcc   : > { %315 = vpush %v226_v32 }
  0xfd   : > { %s316_s8 = spop %315 }
  0xfe   : > { %v228_v33 = vstv %s316_s8 }
  0xff   : > { %230 = vst.msk [vmem:[%s159_s5] sm:$0x1] %vm229_vm6, %v228_v33 }
 0x100 PF: > { %s14_s10 = sadd.s32 1, %s452_s10   ;;  %s562_s6 = smov %s440_s7 }
 0x101   : > { %p11_p7 = scmp.ge.s32.totalorder %s14_s10, 4   ;;  %s548_s7 = smov 0  }
 0x102   : > { %s563_s8 = smov %s448_s9  ;;  %s564_s9 = smov %s566_s12 }
 0x103   :  { %13 = sbr.rel (!%p11_p7) target bundleno = 4 (0x4), region = 80 }
 0x108   :  { %248 = vsyncpa [#allocation4], 1 }
 0x109   :  { %250 = vsyncpa [#allocation4 + $0x1], 1 }

</bundles_post_ra>
